<compile_context>
chip_gen: v7x
topology: tpu7x:2x2x1
jax: 0.10.0
libtpu: 0.0.40
codegen_flags: <defaults>
</compile_context>

<pallas_src>
import math
import numpy as np
import jax
import jax.numpy as jnp
from jax.experimental import pallas as pl
from jax.experimental.pallas import tpu as pltpu

# ---------------- configuration ----------------
L_DIM = 4                      # dim("0e + 1o")
COPIES_IN = 2
COPIES_OUT = 3
DIN = COPIES_IN * L_DIM        # 8
DOUT = COPIES_OUT * L_DIM      # 12
DOUT_PAD = 128                 # padded output rows (dense slab; rows [:DOUT] are valid)
# TODO(synk): e3nn S2Activation(resolution=100) uses a larger s2grid; lmax=1 signals are
# exactly band-limited on this smaller Gauss-Legendre(beta) x uniform(alpha) grid.
RES_BETA, RES_ALPHA = 8, 16
GRID = RES_BETA * RES_ALPHA    # 128
GDIM = COPIES_OUT * GRID       # 384
N = 16                         # demo batch
MAX_TB = 1024                  # batch-tile cap for large N (lane axis, multiple of 128)

# bf16 MXU inputs with f32 accumulation: native on v5e/v6e/v7x MXUs.  Flip to False for
# f32-exact results (tolerance tightens to 1e-4); weights are then kept f32 on the host.
USE_BF16_MXU = True


# ---------------- parameter construction (offline glue) ----------------
def build_tp_weights(key):
    """Dense bilinear tensor W3[i, j, k] for FullyConnectedTensorProduct(x, x).

    Parity-allowed paths for ("0e+1o") x ("0e+1o") -> ("0e+1o"):
      0e*0e -> 0e,  1o.1o -> 0e,  0e*1o -> 1o,  1o*0e -> 1o
    (1o x 1o -> 1e cross product is parity-forbidden for a 1o output.)
    """
    k1, k2, k3, k4 = jax.random.split(key, 4)
    w_ss = np.asarray(jax.random.normal(k1, (COPIES_IN, COPIES_IN, COPIES_OUT)))
    w_vv = np.asarray(jax.random.normal(k2, (COPIES_IN, COPIES_IN, COPIES_OUT)))
    w_sv = np.asarray(jax.random.normal(k3, (COPIES_IN, COPIES_IN, COPIES_OUT)))
    w_vs = np.asarray(jax.random.normal(k4, (COPIES_IN, COPIES_IN, COPIES_OUT)))

    W3 = np.zeros((DIN, DIN, DOUT), np.float32)
    # TODO(synk): approximate e3nn 'path' normalization; exact e3nn variance bookkeeping
    # (component normalization per path) is not reproduced since weights are synthetic.
    norm = 1.0 / math.sqrt(2.0 * COPIES_IN * COPIES_IN)
    inv_s3 = 1.0 / math.sqrt(3.0)
    for u in range(COPIES_IN):
        for v in range(COPIES_IN):
            for w in range(COPIES_OUT):
                su, sv, sw = 4 * u, 4 * v, 4 * w
                # scalar output channel (0e)
                W3[su, sv, sw] += norm * w_ss[u, v, w]
                for m in range(3):
                    W3[su + 1 + m, sv + 1 + m, sw] += norm * inv_s3 * w_vv[u, v, w]
                # vector output channels (1o)
                for m in range(3):
                    W3[su, sv + 1 + m, sw + 1 + m] += norm * inv_s3 * w_sv[u, v, w]
                    W3[su + 1 + m, sv, sw + 1 + m] += norm * inv_s3 * w_vs[u, v, w]
    return W3


def build_s2_matrices():
    """Block-diagonal to-grid / from-grid matrices for S2Activation over copies_out copies.

    Real spherical harmonics up to l=1 in e3nn ordering (1, y, z, x), 'component'
    normalization.  Gauss-Legendre in cos(beta) x uniform alpha makes
    from_grid(to_grid(c)) == c exactly for lmax=1 coefficients.
    """
    cosb, wb = np.polynomial.legendre.leggauss(RES_BETA)      # weights sum to 2
    sinb = np.sqrt(1.0 - cosb ** 2)
    alpha = 2.0 * np.pi * np.arange(RES_ALPHA) / RES_ALPHA
    gx = sinb[:, None] * np.cos(alpha)[None, :]
    gy = sinb[:, None] * np.sin(alpha)[None, :]
    gz = np.broadcast_to(cosb[:, None], (RES_BETA, RES_ALPHA))
    ones = np.ones((RES_BETA, RES_ALPHA))
    s3 = math.sqrt(3.0)
    Y = np.stack([ones, s3 * gy, s3 * gz, s3 * gx], axis=0).reshape(L_DIM, GRID)
    Y = Y.astype(np.float32)
    qw = ((wb / 2.0)[:, None] * np.full((1, RES_ALPHA), 1.0 / RES_ALPHA))
    qw = qw.reshape(GRID).astype(np.float32)                  # mean-over-sphere weights

    Yblk = np.zeros((DOUT, GDIM), np.float32)
    Qblk = np.zeros((GDIM, DOUT), np.float32)
    for c in range(COPIES_OUT):
        Yblk[4 * c:4 * c + 4, c * GRID:(c + 1) * GRID] = Y
        Qblk[c * GRID:(c + 1) * GRID, 4 * c:4 * c + 4] = qw[:, None] * Y.T
    return Yblk, Qblk


def build_fused_operands(key):
    """Offline precompute (host side):
         W3Y^T   = (W3.reshape(64, DOUT) @ Yblk)^T    -> (GDIM, 64)   transposed weights
         QblkP^T = [Qblk | 0]^T                        -> (DOUT_PAD, GDIM)
       Pre-cast to bf16 when USE_BF16_MXU so the kernel does no per-step weight casts and
       the weight DMA is halved."""
    W3 = build_tp_weights(key)                                 # (DIN, DIN, DOUT)
    Yblk, Qblk = build_s2_matrices()                           # (DOUT,GDIM), (GDIM,DOUT)
    W3Y = W3.reshape(DIN * DIN, DOUT) @ Yblk                   # (64, 384)
    QblkP = np.zeros((GDIM, DOUT_PAD), np.float32)
    QblkP[:, :DOUT] = Qblk
    wdtype = jnp.bfloat16 if USE_BF16_MXU else jnp.float32
    W3YT = jnp.asarray(W3Y.T, dtype=wdtype)                    # (384, 64)
    QblkPT = jnp.asarray(QblkP.T, dtype=wdtype)                # (128, 384)
    return W3YT, QblkPT, jnp.asarray(W3), jnp.asarray(Yblk), jnp.asarray(Qblk)


# ---------------- Pallas kernel (hot path) ----------------
def selftp_kernel(xt_ref, w3yt_ref, qblkpt_ref, o_ref):
    xt = xt_ref[...]                                           # (DIN, TB) f32, batch on lanes
    w3yt = w3yt_ref[...]                                       # (GDIM, 64)  bf16/f32
    qblkpt = qblkpt_ref[...]                                   # (128, GDIM) bf16/f32

    # Pairwise products xx^T[i*DIN + j, b] = x[b, i] * x[b, j]:
    # row i is a sublane broadcast against the whole (DIN, TB) tile; pieces are concatenated
    # along sublanes at vreg-aligned offsets -> no cross-lane XLU shuffles, lanes stay
    # batch-dense.
    xxt = jnp.concatenate([xt[i:i + 1, :] * xt for i in range(DIN)], axis=0)  # (64, TB)
    xxt = xxt.astype(w3yt.dtype)

    # Fused tensor product + to-S2-grid: (GDIM, 64) @ (64, TB) on the MXU, f32 accumulate.
    g = jnp.dot(w3yt, xxt, preferred_element_type=jnp.float32)   # (GDIM, TB) f32
    # S2Activation pointwise non-linearity on the sphere grid (EUP), kept in f32.
    g = jnp.tanh(g)

    # from-S2-grid projection back to irrep coefficients: (128, GDIM) @ (GDIM, TB).
    out = jnp.dot(qblkpt, g.astype(qblkpt.dtype), preferred_element_type=jnp.float32)
    o_ref[...] = out.astype(o_ref.dtype)                       # (DOUT_PAD, TB) dense slab


def _choose_tb(n):
    """Batch tile along the lane axis.  Single block for small n (overhead-bound anyway);
    for large n keep tiles big (amortize ~0.35 us/step) while producing >= 2 parallel grid
    steps so both v7x TensorCores are fed."""
    if n <= 256 or n % 128 != 0:
        return n                      # one grid step; lane dim == full array dim is legal
    target = min(MAX_TB, n // 2)
    for tb in range(target - target % 128, 0, -128):
        if n % tb == 0:
            return tb
    return n


def selftp_forward(x, W3YT, QblkPT, *, return_padded=False):
    n = x.shape[0]
    tb = _choose_tb(n)
    assert n % tb == 0
    grid = (n // tb,)

    xt = x.T                                                   # (DIN, n): batch on lanes

    wbytes = W3YT.dtype.itemsize
    cost = pl.CostEstimate(
        flops=2 * n * (DIN * DIN * GDIM + GDIM * DOUT_PAD),
        transcendentals=n * GDIM,
        bytes_accessed=(4 * n * DIN
                        + wbytes * (DIN * DIN * GDIM + GDIM * DOUT_PAD)
                        + 4 * n * DOUT_PAD),
    )

    out_t = pl.pallas_call(
        selftp_kernel,
        out_shape=jax.ShapeDtypeStruct((DOUT_PAD, n), jnp.float32),
        grid_spec=pltpu.PrefetchScalarGridSpec(
            num_scalar_prefetch=0,
            grid=grid,
            in_specs=[
                pl.BlockSpec((DIN, tb), lambda b: (0, b)),          # x^T batch tile
                pl.BlockSpec((GDIM, DIN * DIN), lambda b: (0, 0)),  # fused TP+to-grid weights
                pl.BlockSpec((DOUT_PAD, GDIM), lambda b: (0, 0)),   # from-grid projection
            ],
            out_specs=pl.BlockSpec((DOUT_PAD, tb), lambda b: (0, b)),
        ),
        compiler_params=pltpu.CompilerParams(dimension_semantics=("parallel",)),
        cost_estimate=cost,
    )(xt, W3YT, QblkPT)

    if return_padded:
        # (DOUT_PAD, n) slab; rows [:DOUT] are valid.  Large-N consumers should take this to
        # avoid re-materializing the slice + transpose below (extra HBM round-trip).
        return out_t
    return out_t[:DOUT, :].T                                   # (n, DOUT), module layout


# ---------------- pure-JAX reference for validation ----------------
def selftp_reference(x, W3, Yblk, Qblk):
    y = jnp.einsum('bi,bj,ijk->bk', x, x, W3)
    g = jnp.tanh(y @ Yblk)
    return g @ Qblk


if __name__ == "__main__":
    key = jax.random.PRNGKey(0)
    kx, kw = jax.random.split(key)
    x = jax.random.normal(kx, (N, DIN), dtype=jnp.float32)

    W3YT, QblkPT, W3, Yblk, Qblk = build_fused_operands(kw)

    out = jax.block_until_ready(selftp_forward(x, W3YT, QblkPT))
    ref = jax.block_until_ready(selftp_reference(x, W3, Yblk, Qblk))

    assert out.shape == (N, COPIES_OUT * L_DIM)
    rtol, atol = (2e-2, 2e-2) if USE_BF16_MXU else (1e-4, 1e-4)
    assert jnp.allclose(out, ref, rtol=rtol, atol=atol), "mismatch vs reference"

    print("KERNEL_OK")
</pallas_src>

<mosaic_0001>
module attributes {stable_mosaic.version = 11 : i64} {
  func.func @selftp_kernel(%arg0: i32, %arg1: memref<8x16xf32, #tpu.memory_space<vmem>>, %arg2: memref<384x64xbf16, #tpu.memory_space<vmem>>, %arg3: memref<128x384xbf16, #tpu.memory_space<vmem>>, %arg4: memref<128x16xf32, #tpu.memory_space<vmem>>) attributes {dimension_semantics = [#tpu.dimension_semantics<parallel>], iteration_bounds = array<i64: 1>, scalar_prefetch = 0 : i64, scratch_operands = 0 : i64, tpu.core_type = #tpu.core_type<tc>, window_params = [{transform_indices = @transform_0, window_bounds = array<i64: 8, 16>}, {pipeline_mode = #tpu.pipeline_mode<synchronous>, transform_indices = @transform_1, window_bounds = array<i64: 384, 64>}, {pipeline_mode = #tpu.pipeline_mode<synchronous>, transform_indices = @transform_2, window_bounds = array<i64: 128, 384>}, {transform_indices = @transform_3, window_bounds = array<i64: 128, 16>}]} {
    %c0 = arith.constant 0 : index
    %c0_0 = arith.constant 0 : index
    %0 = vector.load %arg1[%c0, %c0_0] : memref<8x16xf32, #tpu.memory_space<vmem>>, vector<8x16xf32>
    %c0_1 = arith.constant 0 : index
    %c0_2 = arith.constant 0 : index
    %1 = vector.load %arg2[%c0_1, %c0_2] : memref<384x64xbf16, #tpu.memory_space<vmem>>, vector<384x64xbf16>
    %c0_3 = arith.constant 0 : index
    %c0_4 = arith.constant 0 : index
    %2 = vector.load %arg3[%c0_3, %c0_4] : memref<128x384xbf16, #tpu.memory_space<vmem>>, vector<128x384xbf16>
    %3 = vector.extract_strided_slice %0 {offsets = [0, 0], sizes = [1, 16], strides = [1, 1]} : vector<8x16xf32> to vector<1x16xf32>
    %4 = vector.broadcast %3 : vector<1x16xf32> to vector<8x16xf32>
    %5 = arith.mulf %4, %0 : vector<8x16xf32>
    %6 = vector.extract_strided_slice %0 {offsets = [1, 0], sizes = [1, 16], strides = [1, 1]} : vector<8x16xf32> to vector<1x16xf32>
    %7 = vector.broadcast %6 : vector<1x16xf32> to vector<8x16xf32>
    %8 = arith.mulf %7, %0 : vector<8x16xf32>
    %9 = vector.extract_strided_slice %0 {offsets = [2, 0], sizes = [1, 16], strides = [1, 1]} : vector<8x16xf32> to vector<1x16xf32>
    %10 = vector.broadcast %9 : vector<1x16xf32> to vector<8x16xf32>
    %11 = arith.mulf %10, %0 : vector<8x16xf32>
    %12 = vector.extract_strided_slice %0 {offsets = [3, 0], sizes = [1, 16], strides = [1, 1]} : vector<8x16xf32> to vector<1x16xf32>
    %13 = vector.broadcast %12 : vector<1x16xf32> to vector<8x16xf32>
    %14 = arith.mulf %13, %0 : vector<8x16xf32>
    %15 = vector.extract_strided_slice %0 {offsets = [4, 0], sizes = [1, 16], strides = [1, 1]} : vector<8x16xf32> to vector<1x16xf32>
    %16 = vector.broadcast %15 : vector<1x16xf32> to vector<8x16xf32>
    %17 = arith.mulf %16, %0 : vector<8x16xf32>
    %18 = vector.extract_strided_slice %0 {offsets = [5, 0], sizes = [1, 16], strides = [1, 1]} : vector<8x16xf32> to vector<1x16xf32>
    %19 = vector.broadcast %18 : vector<1x16xf32> to vector<8x16xf32>
    %20 = arith.mulf %19, %0 : vector<8x16xf32>
    %21 = vector.extract_strided_slice %0 {offsets = [6, 0], sizes = [1, 16], strides = [1, 1]} : vector<8x16xf32> to vector<1x16xf32>
    %22 = vector.broadcast %21 : vector<1x16xf32> to vector<8x16xf32>
    %23 = arith.mulf %22, %0 : vector<8x16xf32>
    %24 = vector.extract_strided_slice %0 {offsets = [7, 0], sizes = [1, 16], strides = [1, 1]} : vector<8x16xf32> to vector<1x16xf32>
    %25 = vector.broadcast %24 : vector<1x16xf32> to vector<8x16xf32>
    %26 = arith.mulf %25, %0 : vector<8x16xf32>
    %27 = tpu.concatenate %5, %8, %11, %14, %17, %20, %23, %26 in 0 : vector<8x16xf32>, vector<8x16xf32>, vector<8x16xf32>, vector<8x16xf32>, vector<8x16xf32>, vector<8x16xf32>, vector<8x16xf32>, vector<8x16xf32> -> vector<64x16xf32>
    %28 = arith.truncf %27 : vector<64x16xf32> to vector<64x16xbf16>
    %cst = arith.constant dense<0.000000e+00> : vector<384x16xf32>
    %29 = tpu.matmul %1, %28, %cst {dimension_numbers = #tpu.dot_dimension_numbers<[1], [0], [0], [1], [0, 0, 1, 1], [], []>} : vector<384x64xbf16>, vector<64x16xbf16>, vector<384x16xf32> -> vector<384x16xf32>
    %30 = math.tanh %29 : vector<384x16xf32>
    %31 = arith.truncf %30 : vector<384x16xf32> to vector<384x16xbf16>
    %cst_5 = arith.constant dense<0.000000e+00> : vector<128x16xf32>
    %32 = tpu.matmul %2, %31, %cst_5 {dimension_numbers = #tpu.dot_dimension_numbers<[1], [0], [0], [1], [0, 0, 1, 1], [], []>} : vector<128x384xbf16>, vector<384x16xbf16>, vector<128x16xf32> -> vector<128x16xf32>
    %c0_6 = arith.constant 0 : index
    %c0_7 = arith.constant 0 : index
    %33 = vector.load %arg4[%c0_6, %c0_7] : memref<128x16xf32, #tpu.memory_space<vmem>>, vector<128x16xf32>
    tpu.vector_store %arg4[%c0_6, %c0_7], %32 {strides = array<i32>} : memref<128x16xf32, #tpu.memory_space<vmem>>, vector<128x16xf32>,
    return
  }
  func.func @transform_0(%arg0: i32) -> (i32, i32) {
    %c0_i32 = arith.constant 0 : i32
    %c0_i32_0 = arith.constant 0 : i32
    return %c0_i32, %arg0 : i32, i32
  }
  func.func @transform_1(%arg0: i32) -> (i32, i32) {
    %c0_i32 = arith.constant 0 : i32
    %c0_i32_0 = arith.constant 0 : i32
    %c0_i32_1 = arith.constant 0 : i32
    return %c0_i32, %c0_i32_0 : i32, i32
  }
  func.func @transform_2(%arg0: i32) -> (i32, i32) {
    %c0_i32 = arith.constant 0 : i32
    %c0_i32_0 = arith.constant 0 : i32
    %c0_i32_1 = arith.constant 0 : i32
    return %c0_i32, %c0_i32_0 : i32, i32
  }
  func.func @transform_3(%arg0: i32) -> (i32, i32) {
    %c0_i32 = arith.constant 0 : i32
    %c0_i32_0 = arith.constant 0 : i32
    return %c0_i32, %arg0 : i32, i32
  }
}

</mosaic_0001>

<bundles_post_ra>
// kernel: tpu_custom_call.1
= control target key start
LH: loop header
LB: loop body
LE: loop exit
PB: predicated region body
PF: predicated region fallthrough
CT: control target
= control target key end

     0   :  { %v96_v0 = vlaneseq  ;;  %vm260_vm0 = vcmask 523264   ;;  %vm952_vm1 = vcmask 130048   ;;  %s1696_s0 = inlined_call_operand.vmem [shape: f32[8,16], index: 0, kind: input, shape index: {}]   ;;  %s1697_s1 = inlined_call_operand.vmem [shape: bf16[384,64], index: 1, kind: input, shape index: {}]   ;;  %s1698_s2 = inlined_call_operand.vmem [shape: bf16[128,384], index: 2, kind: input, shape index: {}]   ;;  %s1699_s3 = inlined_call_operand.vmem [shape: f32[128,16], index: 3, kind: output, shape index: {}]  }
   0x1   :  { %v1257_v2 = vld [vmem:[%s1697_s1] sm:$0xff]   ;;  %v1258_v32 = vld [vmem:[%s1697_s1 + $0x8] sm:$0xff]   ;;  %v1259_v33 = vld [vmem:[%s1697_s1 + $0x10] sm:$0xff]  }
   0x2   :  { %v97_v1 = vshrl.u32 %v96_v0, 7  ;;  %v15_v3 = vld [vmem:[%s1696_s0] sm:$0xff]  ;;  %1161 = vmatprep.mubr.msk.bf16.mxu0 %vm260_vm0, %v1257_v2  ;;  %v1260_v34 = vld [vmem:[%s1697_s1 + $0x18] sm:$0xff]   ;;  %v1262_v36 = vld [vmem:[%s1697_s1 + $0x28] sm:$0xff]  }
   0x3   :  { %v1261_v35 = vld [vmem:[%s1697_s1 + $0x20] sm:$0xff]   ;;  %v1263_v37 = vld [vmem:[%s1697_s1 + $0x30] sm:$0xff]   ;;  %v1264_v38 = vld [vmem:[%s1697_s1 + $0x38] sm:$0xff]  }
   0x4   :  { %v98_v4 = vsub.s32 0, %v97_v1  ;;  %v103_v5 = vsub.s32 1, %v97_v1  ;;  %v108_v6 = vsub.s32 2, %v97_v1  ;;  %v113_v7 = vsub.s32 3, %v97_v1  ;;  %v1265_v39 = vld [vmem:[%s1697_s1 + $0x40] sm:$0xff]   ;;  %v1266_v40 = vld [vmem:[%s1697_s1 + $0x48] sm:$0xff]  }
   0x5   :  { %v118_v8 = vsub.s32 4, %v97_v1  ;;  %v123_v9 = vsub.s32 5, %v97_v1  ;;  %v128_v10 = vsub.s32 6, %v97_v1  ;;  %v133_v11 = vsub.s32 7, %v97_v1  ;;  %v1267_v41 = vld [vmem:[%s1697_s1 + $0x50] sm:$0xff]   ;;  %v1268_v42 = vld [vmem:[%s1697_s1 + $0x58] sm:$0xff]  }
   0x6   :  { %v99_v12 = vrot.slane %v15_v3, %v98_v4  ;;  %v104_v13 = vrot.slane %v15_v3, %v103_v5  ;;  %v109_v14 = vrot.slane %v15_v3, %v108_v6  ;;  %v114_v15 = vrot.slane %v15_v3, %v113_v7  ;;  %v1269_v43 = vld [vmem:[%s1697_s1 + $0x60] sm:$0xff]   ;;  %v1270_v44 = vld [vmem:[%s1697_s1 + $0x68] sm:$0xff]   ;;  %v1271_v45 = vld [vmem:[%s1697_s1 + $0x70] sm:$0xff]  }
   0x7   :  { %v119_v16 = vrot.slane %v15_v3, %v118_v8  ;;  %v124_v17 = vrot.slane %v15_v3, %v123_v9  ;;  %v129_v22 = vrot.slane %v15_v3, %v128_v10  ;;  %v134_v23 = vrot.slane %v15_v3, %v133_v11  ;;  %v1272_v46 = vld [vmem:[%s1697_s1 + $0x78] sm:$0xff]   ;;  %v1273_v47 = vld [vmem:[%s1697_s1 + $0x80] sm:$0xff]   ;;  %v1274_v48 = vld [vmem:[%s1697_s1 + $0x88] sm:$0xff]  }
   0x8   :  { %v100_v18 = vmul.f32 %v99_v12, %v15_v3  ;;  %v105_v19 = vmul.f32 %v104_v13, %v15_v3  ;;  %v110_v20 = vmul.f32 %v109_v14, %v15_v3  ;;  %v115_v21 = vmul.f32 %v114_v15, %v15_v3  ;;  %v1275_v49 = vld [vmem:[%s1697_s1 + $0x90] sm:$0xff]   ;;  %v1276_v50 = vld [vmem:[%s1697_s1 + $0x98] sm:$0xff]   ;;  %v1277_v51 = vld [vmem:[%s1697_s1 + $0xa0] sm:$0xff]  }
   0x9   :  { %v120_v26 = vmul.f32 %v119_v16, %v15_v3  ;;  %v125_v27 = vmul.f32 %v124_v17, %v15_v3  ;;  %v130_v29 = vmul.f32 %v129_v22, %v15_v3  ;;  %v135_v30 = vmul.f32 %v134_v23, %v15_v3  ;;  %v1278_v52 = vld [vmem:[%s1697_s1 + $0xa8] sm:$0xff]   ;;  %v1279_v53 = vld [vmem:[%s1697_s1 + $0xb0] sm:$0xff]   ;;  %v1280_v54 = vld [vmem:[%s1697_s1 + $0xb8] sm:$0xff]  }
   0xa   :  { %v136_v24 = vpack.c.bf16 %v105_v19, %v100_v18  ;;  %v137_v25 = vpack.c.bf16 %v115_v21, %v110_v20  ;;  %v1283_v55 = vld [vmem:[%s1698_s2 + $0x1c] ss:$12 sps:$4 sm:$0xff]   ;;  %v1304_v58 = vld [vmem:[%s1698_s2 + $0x4] ss:$12 sps:$4 sm:$0xff]  }
   0xb   :  { %v138_v28 = vpack.c.bf16 %v125_v27, %v120_v26  ;;  %v139_v31 = vpack.c.bf16 %v135_v30, %v130_v29  ;;  %798 = vmatprep.mubr.bf16.mxu1 %v1283_v55 }
   0xc   :  { %1153 = vmatprep.subr.bf16.mxu0 %v136_v24 }
   0xd   :  { %1154 = vmatpush3.bf16.msra.mxu0 %v136_v24 }
   0xe   :  { %1155 = vmatprep.subr.bf16.mxu0 %v137_v25 }
  0x11   :  { %1156 = vmatpush3.bf16.msra.mxu0 %v137_v25 }
  0x12   :  { %1157 = vmatprep.subr.bf16.mxu0 %v138_v28 }
  0x15   :  { %1158 = vmatpush3.bf16.msra.mxu0 %v138_v28 }
  0x16   :  { %1159 = vmatprep.subr.bf16.mxu0 %v139_v31 }
  0x19   :  { %1160 = vmatpush3.bf16.msra.mxu0 %v139_v31 }
  0x1c   :  { %1162 = vmatmul.mubr.msk.bf16.vlgmr.msra.gmra.mrb[0].mxu0 %vm260_vm0, %v1258_v32 }
  0x1d   :  { %1165 = vmatprep.mubr.msk.bf16.mxu0 %vm260_vm0, %v1259_v33 }
  0x24   :  { %1166 = vmatmul.mubr.msk.bf16.gmra.mrb[4].mxu0 %vm260_vm0, %v1260_v34 }
  0x25   :  { %1169 = vmatprep.mubr.msk.bf16.mxu0 %vm260_vm0, %v1261_v35 }
  0x2c   :  { %1170 = vmatmul.mubr.msk.bf16.gmra.mrb[8].mxu0 %vm260_vm0, %v1262_v36 }
  0x2d   :  { %1173 = vmatprep.mubr.msk.bf16.mxu0 %vm260_vm0, %v1263_v37 }
  0x34   :  { %1174 = vmatmul.mubr.msk.bf16.gmra.mrb[12].mxu0 %vm260_vm0, %v1264_v38 }
  0x35   :  { %1177 = vmatprep.mubr.msk.bf16.mxu0 %vm260_vm0, %v1265_v39 }
  0x3c   :  { %1178 = vmatmul.mubr.msk.bf16.gmra.mrb[16].mxu0 %vm260_vm0, %v1266_v40 }
  0x3d   :  { %1181 = vmatprep.mubr.msk.bf16.mxu0 %vm260_vm0, %v1267_v41 }
  0x44   :  { %1182 = vmatmul.mubr.msk.bf16.gmra.mrb[20].mxu0 %vm260_vm0, %v1268_v42 }
  0x45   :  { %1185 = vmatprep.mubr.msk.bf16.mxu0 %vm260_vm0, %v1269_v43 }
  0x4c   :  { %1186 = vmatmul.mubr.msk.bf16.gmra.mrb[24].mxu0 %vm260_vm0, %v1270_v44 }
  0x4d   :  { %1189 = vmatprep.mubr.msk.bf16.mxu0 %vm260_vm0, %v1271_v45 }
  0x54   :  { %1190 = vmatmul.mubr.msk.bf16.gmra.mrb[28].mxu0 %vm260_vm0, %v1272_v46 }
  0x55   :  { %1193 = vmatprep.mubr.msk.bf16.mxu0 %vm260_vm0, %v1273_v47 }
  0x5c   :  { %1194 = vmatmul.mubr.msk.bf16.gmra.mrb[32].mxu0 %vm260_vm0, %v1274_v48 }
  0x5d   :  { %1197 = vmatprep.mubr.msk.bf16.mxu0 %vm260_vm0, %v1275_v49 }
  0x64   :  { %1198 = vmatmul.mubr.msk.bf16.gmra.mrb[36].mxu0 %vm260_vm0, %v1276_v50 }
  0x65   :  { %1201 = vmatprep.mubr.msk.bf16.mxu0 %vm260_vm0, %v1277_v51 }
  0x6c   :  { %1202 = vmatmul.mubr.msk.bf16.gmra.mrb[40].mxu0 %vm260_vm0, %v1278_v52 }
  0x6d   :  { %1205 = vmatprep.mubr.msk.bf16.mxu0 %vm260_vm0, %v1279_v53 }
  0x74   :  { %1206 = vmatmul.mubr.msk.bf16.gmra.mrb[44].mxu0 %vm260_vm0, %v1280_v54 }
  0x75   :  { %790 = vmatprep.mubr.bf16.mxu0 %v1304_v58 }
  0xef   :  { %v1163_v56 = vpop.f32.mrb[0].mxu0 }
  0xf0   :  { %1313 = vtanh.f32 %v1163_v56  ;;  %v367_v57 = vpop.f32.mrb[1].mxu0 }
  0xf1   :  { %1315 = vtanh.f32 %v367_v57  ;;  %v1164_v59 = vpop.f32.mrb[2].mxu0 }
  0xf2   :  { %1317 = vtanh.f32 %v1164_v59  ;;  %v370_v60 = vpop.f32.mrb[3].mxu0 }
  0xf3   :  { %1319 = vtanh.f32 %v370_v60 }
  0xf7   :  { %v1167_v61 = vpop.f32.mrb[4].mxu0 }
  0xf8   :  { %1321 = vtanh.f32 %v1167_v61  ;;  %v383_v62 = vpop.f32.mrb[5].mxu0 }
  0xf9   :  { %1323 = vtanh.f32 %v383_v62  ;;  %v1168_v63 = vpop.f32.mrb[6].mxu0 }
  0xfa   :  { %v1314_v0 = vpop.eup %1313  ;;  %1325 = vtanh.f32 %v1168_v63  ;;  %v386_v1 = vpop.f32.mrb[7].mxu0 }
  0xfb   :  { %v1316_v2 = vpop.eup %1315  ;;  %1327 = vtanh.f32 %v386_v1 }
  0xfc   :  { %v1318_v3 = vpop.eup %1317 }
  0xfd   :  { %v1320_v4 = vpop.eup %1319  ;;  %v1534_v5 = vpack.c.bf16 %v1318_v3, %v1314_v0 }
  0xfe   :  { %v1536_v6 = vpack.c.bf16 %v1320_v4, %v1316_v2 }
  0xff   :  { %v1171_v7 = vpop.f32.mrb[8].mxu0 }
 0x100   :  { %1329 = vtanh.f32 %v1171_v7  ;;  %v399_v8 = vpop.f32.mrb[9].mxu0 }
 0x101   :  { %1331 = vtanh.f32 %v399_v8  ;;  %v1172_v9 = vpop.f32.mrb[10].mxu0 }
 0x102   :  { %v1322_v10 = vpop.eup %1321  ;;  %1333 = vtanh.f32 %v1172_v9  ;;  %v402_v11 = vpop.f32.mrb[11].mxu0 }
 0x103   :  { %v1324_v12 = vpop.eup %1323  ;;  %1335 = vtanh.f32 %v402_v11 }
 0x104   :  { %v1326_v13 = vpop.eup %1325 }
 0x105   :  { %v1328_v14 = vpop.eup %1327  ;;  %v1538_v15 = vpack.c.bf16 %v1326_v13, %v1322_v10 }
 0x106   :  { %v1540_v16 = vpack.c.bf16 %v1328_v14, %v1324_v12 }
 0x107   :  { %v1175_v17 = vpop.f32.mrb[12].mxu0 }
 0x108   :  { %1337 = vtanh.f32 %v1175_v17  ;;  %v415_v18 = vpop.f32.mrb[13].mxu0 }
 0x109   :  { %1339 = vtanh.f32 %v415_v18  ;;  %v1176_v19 = vpop.f32.mrb[14].mxu0 }
 0x10a   :  { %v1330_v20 = vpop.eup %1329  ;;  %1341 = vtanh.f32 %v1176_v19  ;;  %v418_v21 = vpop.f32.mrb[15].mxu0 }
 0x10b   :  { %v1332_v22 = vpop.eup %1331  ;;  %1343 = vtanh.f32 %v418_v21 }
 0x10c   :  { %v1334_v23 = vpop.eup %1333 }
 0x10d   :  { %v1336_v24 = vpop.eup %1335  ;;  %v1542_v25 = vpack.c.bf16 %v1334_v23, %v1330_v20  ;;  %v1281_v20 = vld [vmem:[%s1698_s2 + $0x18] ss:$12 sps:$4 sm:$0xff]   ;;  %v1284_v23 = vld [vmem:[%s1698_s2 + $0x34] ss:$12 sps:$4 sm:$0xff]  }
 0x10e   :  { %v1544_v26 = vpack.c.bf16 %v1336_v24, %v1332_v22 }
 0x10f   :  { %v1179_v27 = vpop.f32.mrb[16].mxu0 }
 0x110   :  { %1345 = vtanh.f32 %v1179_v27  ;;  %v431_v28 = vpop.f32.mrb[17].mxu0 }
 0x111   :  { %1347 = vtanh.f32 %v431_v28  ;;  %v1180_v29 = vpop.f32.mrb[18].mxu0 }
 0x112   :  { %v1338_v30 = vpop.eup %1337  ;;  %1349 = vtanh.f32 %v1180_v29  ;;  %v434_v31 = vpop.f32.mrb[19].mxu0 }
 0x113   :  { %v1340_v32 = vpop.eup %1339  ;;  %1351 = vtanh.f32 %v434_v31 }
 0x114   :  { %v1342_v33 = vpop.eup %1341 }
 0x115   :  { %v1344_v34 = vpop.eup %1343  ;;  %v1546_v35 = vpack.c.bf16 %v1342_v33, %v1338_v30  ;;  %v1286_v33 = vld [vmem:[%s1698_s2 + $0x30] ss:$12 sps:$4 sm:$0xff]  }
 0x116   :  { %v1548_v36 = vpack.c.bf16 %v1344_v34, %v1340_v32 }
 0x117   :  { %v1183_v37 = vpop.f32.mrb[20].mxu0 }
 0x118   :  { %1353 = vtanh.f32 %v1183_v37  ;;  %v447_v38 = vpop.f32.mrb[21].mxu0 }
 0x119   :  { %1355 = vtanh.f32 %v447_v38  ;;  %v1184_v39 = vpop.f32.mrb[22].mxu0 }
 0x11a   :  { %v1346_v40 = vpop.eup %1345  ;;  %1357 = vtanh.f32 %v1184_v39  ;;  %v450_v41 = vpop.f32.mrb[23].mxu0 }
 0x11b   :  { %v1348_v42 = vpop.eup %1347  ;;  %1359 = vtanh.f32 %v450_v41 }
 0x11c   :  { %v1350_v43 = vpop.eup %1349 }
 0x11d   :  { %v1352_v44 = vpop.eup %1351  ;;  %v615_v45 = vpack.c.bf16 %v1350_v43, %v1346_v40 }
 0x11e   :  { %v614_v46 = vpack.c.bf16 %v1352_v44, %v1348_v42 }
 0x11f   :  { %v1187_v47 = vpop.f32.mrb[24].mxu0 }
 0x120   :  { %1361 = vtanh.f32 %v1187_v47  ;;  %v463_v48 = vpop.f32.mrb[25].mxu0  ;;  %1073 = vmatprep.subr.bf16.mxu0 %v614_v46  ;;  %1241 = vmatprep.subr.bf16.mxu1 %v614_v46  ;;  %v1290_v47 = vld [vmem:[%s1698_s2 + $0x64] ss:$12 sps:$4 sm:$0xff]  }
 0x121   :  { %1363 = vtanh.f32 %v463_v48  ;;  %v1188_v49 = vpop.f32.mrb[26].mxu0  ;;  %1074 = vmatpush3.bf16.msra.mxu0 %v1536_v6  ;;  %1249 = vmatpush3.bf16.msra.mxu1 %v1536_v6 }
 0x122   :  { %v1354_v50 = vpop.eup %1353  ;;  %1365 = vtanh.f32 %v1188_v49  ;;  %v466_v51 = vpop.f32.mrb[27].mxu0  ;;  %1075 = vmatprep.subr.bf16.mxu0 %v615_v45  ;;  %1242 = vmatprep.subr.bf16.mxu1 %v615_v45  ;;  %v1289_v45 = vld [vmem:[%s1698_s2 + $0x48] ss:$12 sps:$4 sm:$0xff]  }
 0x123   :  { %v1356_v52 = vpop.eup %1355  ;;  %1367 = vtanh.f32 %v466_v51 }
 0x124   :  { %v1358_v53 = vpop.eup %1357 }
 0x125   :  { %v1360_v54 = vpop.eup %1359  ;;  %1076 = vmatpush3.bf16.msra.mxu0 %v1534_v5  ;;  %1250 = vmatpush3.bf16.msra.mxu1 %v1534_v5  ;;  %v617_v55 = vpack.c.bf16 %v1358_v53, %v1354_v50  ;;  %v1292_v53 = vld [vmem:[%s1698_s2 + $0x60] ss:$12 sps:$4 sm:$0xff]  }
 0x126   :  { %v616_v56 = vpack.c.bf16 %v1360_v54, %v1356_v52 }
 0x127   :  { %v1191_v57 = vpop.f32.mrb[28].mxu0 }
 0x128   :  { %1369 = vtanh.f32 %v1191_v57  ;;  %v479_v58 = vpop.f32.mrb[29].mxu0  ;;  %1077 = vmatprep.subr.bf16.mxu0 %v616_v56  ;;  %1243 = vmatprep.subr.bf16.mxu1 %v616_v56 }
 0x129   :  { %1371 = vtanh.f32 %v479_v58  ;;  %v1192_v59 = vpop.f32.mrb[30].mxu0  ;;  %1078 = vmatpush3.bf16.msra.mxu0 %v1540_v16  ;;  %1251 = vmatpush3.bf16.msra.mxu1 %v1540_v16  ;;  %v1295_v58 = vld [vmem:[%s1698_s2 + $0x78] ss:$12 sps:$4 sm:$0xff]  }
 0x12a   :  { %v1362_v60 = vpop.eup %1361  ;;  %1373 = vtanh.f32 %v1192_v59  ;;  %v482_v61 = vpop.f32.mrb[31].mxu0  ;;  %1079 = vmatprep.subr.bf16.mxu0 %v617_v55  ;;  %1244 = vmatprep.subr.bf16.mxu1 %v617_v55  ;;  %v1293_v55 = vld [vmem:[%s1698_s2 + $0x7c] ss:$12 sps:$4 sm:$0xff]   ;;  %v1296_v59 = vld [vmem:[%s1698_s2 + $0x94] ss:$12 sps:$4 sm:$0xff]  }
 0x12b   :  { %v1364_v62 = vpop.eup %1363  ;;  %1375 = vtanh.f32 %v482_v61  ;;  %v1299_v61 = vld [vmem:[%s1698_s2 + $0xac] ss:$12 sps:$4 sm:$0xff]  }
 0x12c   :  { %v1366_v63 = vpop.eup %1365 }
 0x12d   :  { %v1368_v0 = vpop.eup %1367  ;;  %1080 = vmatpush3.bf16.msra.mxu0 %v1538_v15  ;;  %1252 = vmatpush3.bf16.msra.mxu1 %v1538_v15  ;;  %v619_v1 = vpack.c.bf16 %v1366_v63, %v1362_v60  ;;  %v1298_v60 = vld [vmem:[%s1698_s2 + $0x90] ss:$12 sps:$4 sm:$0xff]   ;;  %v1305_v63 = vld [vmem:[%s1698_s2 + $0x8] ss:$12 sps:$4 sm:$0xff]  }
 0x12e   :  { %v618_v2 = vpack.c.bf16 %v1368_v0, %v1364_v62  ;;  %v1301_v62 = vld [vmem:[%s1698_s2 + $0xa8] ss:$12 sps:$4 sm:$0xff]   ;;  %v1306_v0 = vld [vmem:[%s1698_s2 + $0x20] ss:$12 sps:$4 sm:$0xff]  }
 0x12f   :  { %v1195_v3 = vpop.f32.mrb[32].mxu0 }
 0x130   :  { %1377 = vtanh.f32 %v1195_v3  ;;  %v495_v4 = vpop.f32.mrb[33].mxu0  ;;  %1081 = vmatprep.subr.bf16.mxu0 %v618_v2  ;;  %1245 = vmatprep.subr.bf16.mxu1 %v618_v2  ;;  %v1308_v2 = vld [vmem:[%s1698_s2 + $0x50] ss:$12 sps:$4 sm:$0xff]   ;;  %v1309_v3 = vld [vmem:[%s1698_s2 + $0x68] ss:$12 sps:$4 sm:$0xff]  }
 0x131   :  { %1379 = vtanh.f32 %v495_v4  ;;  %v1196_v5 = vpop.f32.mrb[34].mxu0  ;;  %1082 = vmatpush3.bf16.msra.mxu0 %v1544_v26  ;;  %1253 = vmatpush3.bf16.msra.mxu1 %v1544_v26  ;;  %v1310_v4 = vld [vmem:[%s1698_s2 + $0x80] ss:$12 sps:$4 sm:$0xff]  }
 0x132   :  { %v1370_v6 = vpop.eup %1369  ;;  %1381 = vtanh.f32 %v1196_v5  ;;  %v498_v7 = vpop.f32.mrb[35].mxu0  ;;  %1083 = vmatprep.subr.bf16.mxu0 %v619_v1  ;;  %1246 = vmatprep.subr.bf16.mxu1 %v619_v1  ;;  %v1307_v1 = vld [vmem:[%s1698_s2 + $0x38] ss:$12 sps:$4 sm:$0xff]  }
 0x133   :  { %v1372_v8 = vpop.eup %1371  ;;  %1383 = vtanh.f32 %v498_v7  ;;  %v1311_v5 = vld [vmem:[%s1698_s2 + $0x98] ss:$12 sps:$4 sm:$0xff]  }
 0x134   :  { %v1374_v9 = vpop.eup %1373 }
 0x135   :  { %v1376_v10 = vpop.eup %1375  ;;  %1084 = vmatpush3.bf16.msra.mxu0 %v1542_v25  ;;  %1254 = vmatpush3.bf16.msra.mxu1 %v1542_v25  ;;  %v621_v11 = vpack.c.bf16 %v1374_v9, %v1370_v6  ;;  %v1302_v25 = vld [vmem:[%s1698_s2] ss:$12 sps:$4 sm:$0xff]   ;;  %v1312_v6 = vld [vmem:[%s1698_s2 + $0xb0] ss:$12 sps:$4 sm:$0xff]  }
 0x136   :  { %v620_v12 = vpack.c.bf16 %v1376_v10, %v1372_v8 }
 0x137   :  { %v1199_v13 = vpop.f32.mrb[36].mxu0 }
 0x138   :  { %1385 = vtanh.f32 %v1199_v13  ;;  %v511_v14 = vpop.f32.mrb[37].mxu0  ;;  %1085 = vmatprep.subr.bf16.mxu0 %v620_v12  ;;  %1247 = vmatprep.subr.bf16.mxu1 %v620_v12 }
 0x139   :  { %1387 = vtanh.f32 %v511_v14  ;;  %v1200_v15 = vpop.f32.mrb[38].mxu0  ;;  %1086 = vmatpush3.bf16.msra.mxu0 %v1548_v36  ;;  %1255 = vmatpush3.bf16.msra.mxu1 %v1548_v36  ;;  %v1287_v36 = vld [vmem:[%s1698_s2 + $0x4c] ss:$12 sps:$4 sm:$0xff]  }
 0x13a   :  { %v1378_v16 = vpop.eup %1377  ;;  %1389 = vtanh.f32 %v1200_v15  ;;  %v514_v17 = vpop.f32.mrb[39].mxu0  ;;  %1087 = vmatprep.subr.bf16.mxu0 %v621_v11  ;;  %1248 = vmatprep.subr.bf16.mxu1 %v621_v11 }
 0x13b   :  { %v1380_v18 = vpop.eup %1379  ;;  %1391 = vtanh.f32 %v514_v17 }
 0x13c   :  { %v1382_v19 = vpop.eup %1381 }
 0x13d   :  { %v1384_v21 = vpop.eup %1383  ;;  %1088 = vmatpush3.bf16.msra.mxu0 %v1546_v35  ;;  %1256 = vmatpush3.bf16.msra.mxu1 %v1546_v35  ;;  %v623_v22 = vpack.c.bf16 %v1382_v19, %v1378_v16 }
 0x13e   :  { %v622_v24 = vpack.c.bf16 %v1384_v21, %v1380_v18 }
 0x13f   :  { %v1203_v26 = vpop.f32.mrb[40].mxu0 }
 0x140   :  { %799 = vmatmul.mubr.bf16.vlgmr.msra.gmra.mrb[0].mxu1 %v1281_v20  ;;  %1209 = vmatprep.subr.bf16.mxu1 %v622_v24  ;;  %1393 = vtanh.f32 %v1203_v26  ;;  %v527_v27 = vpop.f32.mrb[41].mxu0 }
 0x141   :  { %1210 = vmatpush3.bf16.msra.mxu1 %v622_v24  ;;  %1395 = vtanh.f32 %v527_v27  ;;  %v1204_v28 = vpop.f32.mrb[42].mxu0  ;;  %806 = vmatprep.mubr.bf16.mxu1 %v1284_v23 }
 0x142   :  { %v1386_v29 = vpop.eup %1385  ;;  %1211 = vmatprep.subr.bf16.mxu1 %v623_v22  ;;  %1397 = vtanh.f32 %v1204_v28  ;;  %v530_v30 = vpop.f32.mrb[43].mxu0  ;;  %791 = vmatmul.mubr.bf16.vlgmr.msra.gmra.mrb[48].mxu0 %v1302_v25 }
 0x143   :  { %v1388_v31 = vpop.eup %1387  ;;  %1399 = vtanh.f32 %v530_v30 }
 0x144   :  { %v1390_v32 = vpop.eup %1389 }
 0x145   :  { %v1392_v34 = vpop.eup %1391  ;;  %1212 = vmatpush3.bf16.msra.mxu1 %v623_v22  ;;  %v625_v35 = vpack.c.bf16 %v1390_v32, %v1386_v29 }
 0x146   :  { %v624_v37 = vpack.c.bf16 %v1392_v34, %v1388_v31 }
 0x147   :  { %v1207_v38 = vpop.f32.mrb[44].mxu0 }
 0x148   :  { %807 = vmatmul.mubr.bf16.gmra.mrb[4].mxu1 %v1286_v33  ;;  %1213 = vmatprep.subr.bf16.mxu1 %v624_v37  ;;  %1401 = vtanh.f32 %v1207_v38  ;;  %v543_v39 = vpop.f32.mrb[45].mxu0 }
 0x149   :  { %1214 = vmatpush3.bf16.msra.mxu1 %v624_v37  ;;  %814 = vmatprep.mubr.bf16.mxu1 %v1287_v36  ;;  %1403 = vtanh.f32 %v543_v39  ;;  %v1208_v40 = vpop.f32.mrb[46].mxu0 }
 0x14a   :  { %v1394_v41 = vpop.eup %1393  ;;  %1215 = vmatprep.subr.bf16.mxu1 %v625_v35  ;;  %1405 = vtanh.f32 %v1208_v40  ;;  %v546_v42 = vpop.f32.mrb[47].mxu0 }
 0x14b   :  { %v1396_v43 = vpop.eup %1395  ;;  %1407 = vtanh.f32 %v546_v42 }
 0x14c   :  { %v1398_v44 = vpop.eup %1397 }
 0x14d   :  { %v1400_v46 = vpop.eup %1399  ;;  %1216 = vmatpush3.bf16.msra.mxu1 %v625_v35  ;;  %v627_v48 = vpack.c.bf16 %v1398_v44, %v1394_v41 }
 0x14e   :  { %v626_v49 = vpack.c.bf16 %v1400_v46, %v1396_v43 }
 0x150   :  { %815 = vmatmul.mubr.bf16.gmra.mrb[8].mxu1 %v1289_v45  ;;  %1217 = vmatprep.subr.bf16.mxu1 %v626_v49 }
 0x151   :  { %1218 = vmatpush3.bf16.msra.mxu1 %v626_v49  ;;  %822 = vmatprep.mubr.bf16.mxu1 %v1290_v47 }
 0x152   :  { %v1402_v50 = vpop.eup %1401  ;;  %1219 = vmatprep.subr.bf16.mxu1 %v627_v48 }
 0x153   :  { %v1404_v51 = vpop.eup %1403 }
 0x154   :  { %v1406_v52 = vpop.eup %1405 }
 0x155   :  { %v1408_v54 = vpop.eup %1407  ;;  %1220 = vmatpush3.bf16.msra.mxu1 %v627_v48  ;;  %v629_v56 = vpack.c.bf16 %v1406_v52, %v1402_v50 }
 0x156   :  { %v628_v57 = vpack.c.bf16 %v1408_v54, %v1404_v51 }
 0x158   :  { %823 = vmatmul.mubr.bf16.gmra.mrb[12].mxu1 %v1292_v53  ;;  %1221 = vmatprep.subr.bf16.mxu1 %v628_v57 }
 0x159   :  { %830 = vmatprep.mubr.bf16.mxu1 %v1293_v55  ;;  %1222 = vmatpush3.bf16.msra.mxu1 %v628_v57 }
 0x15a   :  { %1223 = vmatprep.subr.bf16.mxu1 %v629_v56 }
 0x15d   :  { %1224 = vmatpush3.bf16.msra.mxu1 %v629_v56 }
 0x160   :  { %831 = vmatmul.mubr.bf16.gmra.mrb[16].mxu1 %v1295_v58 }
 0x161   :  { %838 = vmatprep.mubr.bf16.mxu1 %v1296_v59 }
 0x168   :  { %839 = vmatmul.mubr.bf16.gmra.mrb[20].mxu1 %v1298_v60 }
 0x169   :  { %846 = vmatprep.mubr.bf16.mxu1 %v1299_v61 }
 0x170   :  { %847 = vmatmul.mubr.bf16.gmra.mrb[24].mxu1 %v1301_v62 }
 0x171   :  { %1225 = vmatprep.mubr.bf16.mxu1 %v1305_v63 }
 0x178   :  { %1226 = vmatmul.mubr.bf16.vlgmr.msra.gmra.mrb[28].mxu1 %v1306_v0 }
 0x179   :  { %1229 = vmatprep.mubr.bf16.mxu1 %v1307_v1 }
 0x180   :  { %1230 = vmatmul.mubr.bf16.gmra.mrb[32].mxu1 %v1308_v2 }
 0x181   :  { %1233 = vmatprep.mubr.bf16.mxu1 %v1309_v3 }
 0x188   :  { %1234 = vmatmul.mubr.bf16.gmra.mrb[36].mxu1 %v1310_v4 }
 0x189   :  { %1237 = vmatprep.mubr.bf16.mxu1 %v1311_v5 }
 0x190   :  { %1238 = vmatmul.mubr.bf16.gmra.mrb[40].mxu1 %v1312_v6 }
 0x213   :  { %v1095_v7 = vpop.f32.mrb[0].mxu1 }
 0x214   :  { %v1096_v8 = vpop.f32.mrb[1].mxu1 }
 0x215   :  { %v1097_v9 = vadd.f32 %v1096_v8, %v1095_v7  ;;  %v1098_v10 = vpop.f32.mrb[2].mxu1  ;;  %v1089_v11 = vpop.f32.mrb[48].mxu0 }
 0x216   :  { %v1099_v12 = vpop.f32.mrb[3].mxu1  ;;  %v1090_v13 = vpop.f32.mrb[49].mxu0 }
 0x217   :  { %v1100_v14 = vadd.f32 %v1099_v12, %v1098_v10  ;;  %v1091_v15 = vadd.f32 %v1090_v13, %v1089_v11  ;;  %v1092_v16 = vpop.f32.mrb[50].mxu0 }
 0x218   :  { %v1093_v17 = vpop.f32.mrb[51].mxu0 }
 0x219   :  { %v1094_v18 = vadd.f32 %v1093_v17, %v1092_v16 }
 0x21b   :  { %v1101_v19 = vpop.f32.mrb[4].mxu1 }
 0x21c   :  { %v1102_v20 = vpop.f32.mrb[5].mxu1 }
 0x21d   :  { %v1103_v21 = vadd.f32 %v1102_v20, %v1101_v19  ;;  %v1104_v22 = vpop.f32.mrb[6].mxu1 }
 0x21e   :  { %v1105_v23 = vpop.f32.mrb[7].mxu1 }
 0x21f   :  { %v1106_v24 = vadd.f32 %v1105_v23, %v1104_v22 }
 0x223   :  { %v1107_v25 = vpop.f32.mrb[8].mxu1 }
 0x224   :  { %v1108_v26 = vpop.f32.mrb[9].mxu1 }
 0x225   :  { %v1109_v27 = vadd.f32 %v1108_v26, %v1107_v25  ;;  %v1110_v28 = vpop.f32.mrb[10].mxu1 }
 0x226   :  { %v1111_v29 = vpop.f32.mrb[11].mxu1 }
 0x227   :  { %v1112_v30 = vadd.f32 %v1111_v29, %v1110_v28 }
 0x22b   :  { %v1113_v31 = vpop.f32.mrb[12].mxu1 }
 0x22c   :  { %v1114_v32 = vpop.f32.mrb[13].mxu1 }
 0x22d   :  { %v1115_v33 = vadd.f32 %v1114_v32, %v1113_v31  ;;  %v1116_v34 = vpop.f32.mrb[14].mxu1 }
 0x22e   :  { %v1117_v35 = vpop.f32.mrb[15].mxu1 }
 0x22f   :  { %v1118_v36 = vadd.f32 %v1117_v35, %v1116_v34 }
 0x233   :  { %v1119_v37 = vpop.f32.mrb[16].mxu1 }
 0x234   :  { %v1120_v38 = vpop.f32.mrb[17].mxu1 }
 0x235   :  { %v1121_v39 = vadd.f32 %v1120_v38, %v1119_v37  ;;  %v1122_v40 = vpop.f32.mrb[18].mxu1 }
 0x236   :  { %v1123_v41 = vpop.f32.mrb[19].mxu1 }
 0x237   :  { %v1124_v42 = vadd.f32 %v1123_v41, %v1122_v40 }
 0x23b   :  { %v1125_v43 = vpop.f32.mrb[20].mxu1 }
 0x23c   :  { %v1126_v44 = vpop.f32.mrb[21].mxu1 }
 0x23d   :  { %v1127_v45 = vadd.f32 %v1126_v44, %v1125_v43  ;;  %v1128_v46 = vpop.f32.mrb[22].mxu1 }
 0x23e   :  { %v1129_v47 = vpop.f32.mrb[23].mxu1 }
 0x23f   :  { %v1130_v48 = vadd.f32 %v1129_v47, %v1128_v46 }
 0x243   :  { %v1131_v49 = vpop.f32.mrb[24].mxu1 }
 0x244   :  { %v1132_v50 = vpop.f32.mrb[25].mxu1 }
 0x245   :  { %v1133_v51 = vadd.f32 %v1132_v50, %v1131_v49  ;;  %v1134_v52 = vpop.f32.mrb[26].mxu1 }
 0x246   :  { %v1135_v53 = vpop.f32.mrb[27].mxu1 }
 0x247   :  { %v1136_v54 = vadd.f32 %v1135_v53, %v1134_v52 }
 0x24b   :  { %v1227_v55 = vpop.f32.mrb[28].mxu1 }
 0x24c   :  { %v898_v56 = vadd.f32 %v1227_v55, %v1097_v9  ;;  %v889_v57 = vpop.f32.mrb[29].mxu1 }
 0x24d   :  { %v890_v58 = vadd.f32 %v1091_v15, %v889_v57  ;;  %v1228_v59 = vpop.f32.mrb[30].mxu1 }
 0x24e   :  { %955 = vst.msk [vmem:[%s1699_s3 + $0x10] sm:$0xff] %vm952_vm1, %v898_v56  ;;  %v901_v60 = vadd.f32 %v1228_v59, %v1100_v14  ;;  %v892_v61 = vpop.f32.mrb[31].mxu1 }
 0x24f   :  { %953 = vst.msk [vmem:[%s1699_s3] sm:$0xff] %vm952_vm1, %v890_v58  ;;  %v893_v62 = vadd.f32 %v1094_v18, %v892_v61 }
 0x250   :  { %956 = vst.msk [vmem:[%s1699_s3 + $0x18] sm:$0xff] %vm952_vm1, %v901_v60 }
 0x251   :  { %954 = vst.msk [vmem:[%s1699_s3 + $0x8] sm:$0xff] %vm952_vm1, %v893_v62 }
 0x253   :  { %v1231_v63 = vpop.f32.mrb[32].mxu1 }
 0x254   :  { %v914_v0 = vadd.f32 %v1231_v63, %v1109_v27  ;;  %v905_v1 = vpop.f32.mrb[33].mxu1 }
 0x255   :  { %v906_v2 = vadd.f32 %v1103_v21, %v905_v1  ;;  %v1232_v3 = vpop.f32.mrb[34].mxu1 }
 0x256   :  { %959 = vst.msk [vmem:[%s1699_s3 + $0x30] sm:$0xff] %vm952_vm1, %v914_v0  ;;  %v917_v4 = vadd.f32 %v1232_v3, %v1112_v30  ;;  %v908_v5 = vpop.f32.mrb[35].mxu1 }
 0x257   :  { %957 = vst.msk [vmem:[%s1699_s3 + $0x20] sm:$0xff] %vm952_vm1, %v906_v2  ;;  %v909_v6 = vadd.f32 %v1106_v24, %v908_v5 }
 0x258   :  { %960 = vst.msk [vmem:[%s1699_s3 + $0x38] sm:$0xff] %vm952_vm1, %v917_v4 }
 0x259   :  { %958 = vst.msk [vmem:[%s1699_s3 + $0x28] sm:$0xff] %vm952_vm1, %v909_v6 }
 0x25b   :  { %v1235_v7 = vpop.f32.mrb[36].mxu1 }
 0x25c   :  { %v930_v8 = vadd.f32 %v1235_v7, %v1121_v39  ;;  %v921_v9 = vpop.f32.mrb[37].mxu1 }
 0x25d   :  { %v922_v10 = vadd.f32 %v1115_v33, %v921_v9  ;;  %v1236_v11 = vpop.f32.mrb[38].mxu1 }
 0x25e   :  { %963 = vst.msk [vmem:[%s1699_s3 + $0x50] sm:$0xff] %vm952_vm1, %v930_v8  ;;  %v933_v12 = vadd.f32 %v1236_v11, %v1124_v42  ;;  %v924_v13 = vpop.f32.mrb[39].mxu1 }
 0x25f   :  { %961 = vst.msk [vmem:[%s1699_s3 + $0x40] sm:$0xff] %vm952_vm1, %v922_v10  ;;  %v925_v14 = vadd.f32 %v1118_v36, %v924_v13 }
 0x260   :  { %964 = vst.msk [vmem:[%s1699_s3 + $0x58] sm:$0xff] %vm952_vm1, %v933_v12 }
 0x261   :  { %962 = vst.msk [vmem:[%s1699_s3 + $0x48] sm:$0xff] %vm952_vm1, %v925_v14 }
 0x263   :  { %v1239_v15 = vpop.f32.mrb[40].mxu1 }
 0x264   :  { %v946_v16 = vadd.f32 %v1239_v15, %v1133_v51  ;;  %v937_v17 = vpop.f32.mrb[41].mxu1 }
 0x265   :  { %v938_v18 = vadd.f32 %v1127_v45, %v937_v17  ;;  %v1240_v19 = vpop.f32.mrb[42].mxu1 }
 0x266   :  { %967 = vst.msk [vmem:[%s1699_s3 + $0x70] sm:$0xff] %vm952_vm1, %v946_v16  ;;  %v949_v20 = vadd.f32 %v1240_v19, %v1136_v54  ;;  %v940_v21 = vpop.f32.mrb[43].mxu1 }
 0x267   :  { %965 = vst.msk [vmem:[%s1699_s3 + $0x60] sm:$0xff] %vm952_vm1, %v938_v18  ;;  %v941_v22 = vadd.f32 %v1130_v48, %v940_v21 }
 0x268   :  { %968 = vst.msk [vmem:[%s1699_s3 + $0x78] sm:$0xff] %vm952_vm1, %v949_v20 }
 0x269   :  { %966 = vst.msk [vmem:[%s1699_s3 + $0x68] sm:$0xff] %vm952_vm1, %v941_v22 }

</bundles_post_ra>
